<compile_context>
chip_gen: v7x
topology: tpu7x:2x2x1
jax: 0.10.0
libtpu: 0.0.40
codegen_flags: <defaults>
</compile_context>

<pallas_src>
import functools

import jax
import jax.numpy as jnp
from jax.experimental import pallas as pl
from jax.experimental.pallas import tpu as pltpu


def _round_up(x, m):
    return ((x + m - 1) // m) * m


def _project_pos_layernorm(x_bf16, pid_ref, w_ref, pos_hi_ref, pos_lo_ref,
                           gamma_ref, beta_ref, o_ref, *, eps, hidden_valid,
                           hidden_pad):
    """Shared tail: E->H projection, position add, LayerNorm, store."""
    tn = x_bf16.shape[0]
    pp = pos_hi_ref.shape[0]

    # Factorized projection E -> H (bf16 MXU, f32 accumulation).
    h = jnp.dot(x_bf16, w_ref[...], preferred_element_type=jnp.float32)

    # Fused position(+token-type row 0) gather: one_hot(pos_ids) @ table.
    # The table is a bf16 hi/lo split of the f32 values; two bf16 MXU passes
    # reproduce the f32 gather to ~1e-5 relative accuracy.
    onehot_p = (jax.lax.broadcasted_iota(jnp.int32, (tn, pp), 1)
                == pid_ref[...]).astype(jnp.bfloat16)
    h = h + jnp.dot(onehot_p, pos_hi_ref[...],
                    preferred_element_type=jnp.float32)
    h = h + jnp.dot(onehot_p, pos_lo_ref[...],
                    preferred_element_type=jnp.float32)

    # LayerNorm over the true hidden width H. Padded lanes of h are exact
    # zeros (padded columns of W2 / pos tables are zero), so:
    #   sum(h)            == true sum over H
    #   sum((h - mean)^2) == true sum + (Hp - H) * mean^2
    # -> algebraic correction, no per-element mask pass over [TN, Hp].
    inv_h = 1.0 / hidden_valid
    extra = float(hidden_pad - hidden_valid)
    mean = jnp.sum(h, axis=-1, keepdims=True) * inv_h
    centered = h - mean
    var = (jnp.sum(centered * centered, axis=-1, keepdims=True)
           - extra * (mean * mean)) * inv_h
    o_ref[...] = ((centered * jax.lax.rsqrt(var + eps)) * gamma_ref[...]
                  + beta_ref[...]).astype(o_ref.dtype)
    # TODO(synk): training-mode dropout (pltpu.prng_random_bits) intentionally
    # not implemented; eval-mode dropout is identity.


def _fused_gather_kernel(ids_ref, pid_ref, word_ref, w_ref, pos_hi_ref,
                         pos_lo_ref, gamma_ref, beta_ref, o_ref, *, eps,
                         hidden_valid, hidden_pad):
    # Word-embedding gather fused in-kernel: one_hot(ids) @ word table (bf16,
    # exact 0/1 select of bf16 table rows).
    tn = ids_ref.shape[0]
    vp = word_ref.shape[0]
    onehot_w = (jax.lax.broadcasted_iota(jnp.int32, (tn, vp), 1)
                == ids_ref[...]).astype(jnp.bfloat16)
    x = jnp.dot(onehot_w, word_ref[...], preferred_element_type=jnp.float32)
    _project_pos_layernorm(x.astype(jnp.bfloat16), pid_ref, w_ref, pos_hi_ref,
                           pos_lo_ref, gamma_ref, beta_ref, o_ref, eps=eps,
                           hidden_valid=hidden_valid, hidden_pad=hidden_pad)


def _pregathered_kernel(x_ref, pid_ref, w_ref, pos_hi_ref, pos_lo_ref,
                        gamma_ref, beta_ref, o_ref, *, eps, hidden_valid,
                        hidden_pad):
    _project_pos_layernorm(x_ref[...], pid_ref, w_ref, pos_hi_ref, pos_lo_ref,
                           gamma_ref, beta_ref, o_ref, eps=eps,
                           hidden_valid=hidden_valid, hidden_pad=hidden_pad)


def small_embeddings_forward(input_ids, params, *, pad_token_id, eps,
                             tile_n=512, out_dtype=jnp.float32,
                             fuse_word_gather_max_bytes=4 * 1024 * 1024):
    """input_ids: int32 [B, S]. Returns out_dtype [B, S, H]."""
    B, S = input_ids.shape
    word_emb = params["word_embeddings"]          # [V, E]
    w2 = params["word_embeddings_2"]              # [E, H]
    pos_emb = params["position_embeddings"]       # [P, H]
    typ_emb = params["token_type_embeddings"]     # [T, H]
    gamma = params["ln_gamma"]                    # [H]
    beta = params["ln_beta"]                      # [H]

    V, E = word_emb.shape
    H = w2.shape[1]
    P = pos_emb.shape[0]
    N = B * S

    # Position ids must fit the table; otherwise the one-hot gather would
    # silently drop the position embedding instead of matching the reference.
    if S + pad_token_id >= P:
        raise ValueError(
            f"seq_len + pad_token_id ({S + pad_token_id}) must be < "
            f"max_position_embeddings ({P})")

    # --- glue: position ids (cheap, plain JAX) ---
    mask = (input_ids != pad_token_id).astype(jnp.int32)
    position_ids = jnp.cumsum(mask, axis=1) * mask + pad_token_id   # [B, S]
    pids = position_ids.reshape(N, 1).astype(jnp.int32)

    # --- lane-dense padding of the parameter tables (exact: zero padding) ---
    Hp = _round_up(H, 128)
    Ep = _round_up(E, 128)
    Pp = _round_up(P, 8)
    Vp = _round_up(V, 8)

    w2_p = jnp.pad(w2, ((0, Ep - E), (0, Hp - H))).astype(jnp.bfloat16)

    # Fold the (all-zero token_type_ids) token-type row into the position
    # table once, then split into a bf16 hi/lo pair (hi + lo ~= f32 table).
    pos_pt = jnp.pad((pos_emb + typ_emb[0:1, :]).astype(jnp.float32),
                     ((0, Pp - P), (0, Hp - H)))
    pos_hi = pos_pt.astype(jnp.bfloat16)
    pos_lo = (pos_pt - pos_hi.astype(jnp.float32)).astype(jnp.bfloat16)

    gamma2d = jnp.pad(gamma, (0, Hp - H),
                      constant_values=1.0).reshape(1, Hp).astype(jnp.float32)
    beta2d = jnp.pad(beta, (0, Hp - H)).reshape(1, Hp).astype(jnp.float32)

    # --- row tiling: double-buffered pipeline over N, parallel across TCs ---
    tile_n = max(8, min(int(tile_n), _round_up(N, 8)))
    tile_n = _round_up(tile_n, 8)
    # prefer >= 2 tiles so both v7x TensorCores get work
    if _round_up(N, tile_n) // tile_n < 2 and tile_n >= 16:
        tile_n = _round_up(tile_n // 2, 8)
    n_pad = _round_up(N, tile_n)
    num_tiles = n_pad // tile_n
    if num_tiles > 1 and num_tiles % 2 == 1:   # balanced split across 2 TCs
        n_pad += tile_n
        num_tiles += 1

    pids = jnp.pad(pids, ((0, n_pad - N), (0, 0)))

    fuse_word_gather = (Vp * Ep * 2) <= fuse_word_gather_max_bytes
    kern_kwargs = dict(eps=eps, hidden_valid=H, hidden_pad=Hp)
    out_bytes = jnp.dtype(out_dtype).itemsize

    if fuse_word_gather:
        word_p = jnp.pad(word_emb, ((0, Vp - V),
                                    (0, Ep - E))).astype(jnp.bfloat16)
        ids = jnp.pad(input_ids.reshape(N, 1).astype(jnp.int32),
                      ((0, n_pad - N), (0, 0)))
        kernel = functools.partial(_fused_gather_kernel, **kern_kwargs)
        row_specs = [
            pl.BlockSpec((tile_n, 1), lambda i: (i, 0)),    # word ids
            pl.BlockSpec((tile_n, 1), lambda i: (i, 0)),    # position ids
            pl.BlockSpec((Vp, Ep), lambda i: (0, 0)),       # word table (res.)
        ]
        row_args = (ids, pids, word_p)
        stream_in_bytes = 2 * tile_n * 4
        resident_bytes = Vp * Ep * 2
        gather_flops = 2 * n_pad * Vp * Ep
    else:
        # TODO(synk): for very large vocabularies, scalar-prefetch input_ids
        # and DMA-gather word rows in-kernel (memory_space=pl.ANY +
        # pltpu.make_async_copy) instead of this wrapper-side jnp.take.
        x = jnp.take(word_emb, input_ids.reshape(-1),
                     axis=0).astype(jnp.bfloat16)
        x = jnp.pad(x, ((0, n_pad - N), (0, Ep - E)))
        kernel = functools.partial(_pregathered_kernel, **kern_kwargs)
        row_specs = [
            pl.BlockSpec((tile_n, Ep), lambda i: (i, 0)),   # gathered x
            pl.BlockSpec((tile_n, 1), lambda i: (i, 0)),    # position ids
        ]
        row_args = (x, pids)
        stream_in_bytes = tile_n * Ep * 2 + tile_n * 4
        resident_bytes = 0
        gather_flops = 0

    shared_specs = [
        pl.BlockSpec((Ep, Hp), lambda i: (0, 0)),           # W2 (VMEM-res.)
        pl.BlockSpec((Pp, Hp), lambda i: (0, 0)),           # pos+typ (hi)
        pl.BlockSpec((Pp, Hp), lambda i: (0, 0)),           # pos+typ (lo)
        pl.BlockSpec((1, Hp), lambda i: (0, 0)),            # gamma
        pl.BlockSpec((1, Hp), lambda i: (0, 0)),            # beta
    ]
    shared_args = (w2_p, pos_hi, pos_lo, gamma2d, beta2d)
    resident_bytes += Ep * Hp * 2 + 2 * Pp * Hp * 2 + 2 * Hp * 4

    # VMEM budget: resident tables + double-buffered streams + in-kernel
    # temporaries, with headroom.  Never a blanket 64 MiB (== all of v7x VMEM).
    temp_bytes = tile_n * ((Vp * 2 if fuse_word_gather else 0)
                           + Pp * 2 + Ep * 4 + 4 * Hp * 4)
    footprint = (resident_bytes
                 + 2 * (stream_in_bytes + tile_n * Hp * out_bytes)
                 + temp_bytes)
    vmem_limit = int(min(max(footprint * 3 // 2, 16 * 1024 * 1024),
                         32 * 1024 * 1024))

    flops = gather_flops + 2 * n_pad * (Ep * Hp + 2 * Pp * Hp)
    bytes_accessed = (num_tiles * stream_in_bytes + resident_bytes
                      + n_pad * Hp * out_bytes)
    cost = pl.CostEstimate(flops=flops, transcendentals=n_pad,
                           bytes_accessed=bytes_accessed)

    out = pl.pallas_call(
        kernel,
        out_shape=jax.ShapeDtypeStruct((n_pad, Hp), out_dtype),
        grid=(num_tiles,),
        in_specs=row_specs + shared_specs,
        out_specs=pl.BlockSpec((tile_n, Hp), lambda i: (i, 0)),
        compiler_params=pltpu.CompilerParams(
            dimension_semantics=("parallel",),
            vmem_limit_bytes=vmem_limit),
        cost_estimate=cost,
    )(*row_args, *shared_args)

    return out[:N, :H].reshape(B, S, H)


def _reference_forward(input_ids, params, *, pad_token_id, eps):
    """Pure-JAX f32 reference mirroring the PyTorch module (eval mode)."""
    mask = (input_ids != pad_token_id).astype(jnp.int32)
    position_ids = jnp.cumsum(mask, axis=1) * mask + pad_token_id
    x = jnp.take(params["word_embeddings"], input_ids, axis=0)
    h = jnp.einsum("bse,eh->bsh", x, params["word_embeddings_2"])
    h = h + params["token_type_embeddings"][0]
    h = h + jnp.take(params["position_embeddings"], position_ids, axis=0)
    mean = jnp.mean(h, axis=-1, keepdims=True)
    var = jnp.mean((h - mean) ** 2, axis=-1, keepdims=True)
    return ((h - mean) * jax.lax.rsqrt(var + eps)
            * params["ln_gamma"] + params["ln_beta"])


def init_params(key, *, vocab_size, embedding_size, hidden_size,
                max_position_embeddings, type_vocab_size, pad_token_id):
    k1, k2, k3, k4 = jax.random.split(key, 4)
    word = 0.02 * jax.random.normal(k1, (vocab_size, embedding_size),
                                    jnp.float32)
    word = word.at[pad_token_id].set(0.0)                 # padding_idx row zeroed
    w2 = 0.02 * jax.random.normal(k2, (embedding_size, hidden_size),
                                  jnp.float32)
    pos = 0.02 * jax.random.normal(k3, (max_position_embeddings, hidden_size),
                                   jnp.float32)
    pos = pos.at[pad_token_id].set(0.0)                   # padding_idx row zeroed
    typ = 0.02 * jax.random.normal(k4, (type_vocab_size, hidden_size),
                                   jnp.float32)
    gamma = jnp.ones((hidden_size,), jnp.float32)
    beta = jnp.zeros((hidden_size,), jnp.float32)
    return {
        "word_embeddings": word,
        "word_embeddings_2": w2,
        "position_embeddings": pos,
        "token_type_embeddings": typ,
        "ln_gamma": gamma,
        "ln_beta": beta,
    }


if __name__ == "__main__":
    # Small config consistent with the module's __init__.
    VOCAB = 64
    EMB = 16          # embedding_size (factorized, smaller than hidden)
    HIDDEN = 32       # hidden_size
    MAX_POS = 128     # max_position_embeddings (> seq + pad)
    TYPE_VOCAB = 2
    PAD = 1           # pad_token_id / padding_idx
    EPS = 1e-12
    B, S = 2, 64

    key = jax.random.PRNGKey(0)
    kp, kx = jax.random.split(key)
    params = init_params(
        kp, vocab_size=VOCAB, embedding_size=EMB, hidden_size=HIDDEN,
        max_position_embeddings=MAX_POS, type_vocab_size=TYPE_VOCAB,
        pad_token_id=PAD)

    input_ids = jax.random.randint(kx, (B, S), 0, VOCAB, dtype=jnp.int32)
    # make a few positions padding to exercise the position-id logic
    input_ids = input_ids.at[0, -3:].set(PAD)

    ref = _reference_forward(input_ids, params, pad_token_id=PAD, eps=EPS)

    # Primary path: fused in-kernel word gather (small vocab, VMEM-resident).
    out = small_embeddings_forward(input_ids, params, pad_token_id=PAD,
                                   eps=EPS)
    jax.block_until_ready(out)
    assert out.shape == (B, S, HIDDEN)
    err = float(jnp.max(jnp.abs(out - ref)))
    assert err < 1e-2, f"fused-gather path max abs error vs reference: {err}"

    # Fallback path: pre-gathered word embeddings streamed from HBM
    # (the large-vocabulary configuration).
    out2 = small_embeddings_forward(input_ids, params, pad_token_id=PAD,
                                    eps=EPS, fuse_word_gather_max_bytes=0)
    jax.block_until_ready(out2)
    assert out2.shape == (B, S, HIDDEN)
    err2 = float(jnp.max(jnp.abs(out2 - ref)))
    assert err2 < 1e-2, f"pre-gathered path max abs error vs reference: {err2}"

    print("KERNEL_OK")
</pallas_src>

<mosaic_0001>
module attributes {stable_mosaic.version = 11 : i64} {
  func.func @_fused_gather_kernel(%arg0: i32, %arg1: memref<64x1xi32, #tpu.memory_space<vmem>>, %arg2: memref<64x1xi32, #tpu.memory_space<vmem>>, %arg3: memref<64x128xbf16, #tpu.memory_space<vmem>>, %arg4: memref<128x128xbf16, #tpu.memory_space<vmem>>, %arg5: memref<128x128xbf16, #tpu.memory_space<vmem>>, %arg6: memref<128x128xbf16, #tpu.memory_space<vmem>>, %arg7: memref<1x128xf32, #tpu.memory_space<vmem>>, %arg8: memref<1x128xf32, #tpu.memory_space<vmem>>, %arg9: memref<64x128xf32, #tpu.memory_space<vmem>>) attributes {dimension_semantics = [#tpu.dimension_semantics<parallel>], iteration_bounds = array<i64: 2>, scalar_prefetch = 0 : i64, scratch_operands = 0 : i64, tpu.core_type = #tpu.core_type<tc>, window_params = [{transform_indices = @transform_0, window_bounds = array<i64: 64, 1>}, {transform_indices = @transform_1, window_bounds = array<i64: 64, 1>}, {pipeline_mode = #tpu.pipeline_mode<synchronous>, transform_indices = @transform_2, window_bounds = array<i64: 64, 128>}, {pipeline_mode = #tpu.pipeline_mode<synchronous>, transform_indices = @transform_3, window_bounds = array<i64: 128, 128>}, {pipeline_mode = #tpu.pipeline_mode<synchronous>, transform_indices = @transform_4, window_bounds = array<i64: 128, 128>}, {pipeline_mode = #tpu.pipeline_mode<synchronous>, transform_indices = @transform_5, window_bounds = array<i64: 128, 128>}, {pipeline_mode = #tpu.pipeline_mode<synchronous>, transform_indices = @transform_6, window_bounds = array<i64: 1, 128>}, {pipeline_mode = #tpu.pipeline_mode<synchronous>, transform_indices = @transform_7, window_bounds = array<i64: 1, 128>}, {transform_indices = @transform_8, window_bounds = array<i64: 64, 128>}]} {
    %0 = tpu.iota {dimensions = array<i32: 1>} : vector<64x64xi32>
    %c0 = arith.constant 0 : index
    %c0_0 = arith.constant 0 : index
    %1 = vector.load %arg1[%c0, %c0_0] : memref<64x1xi32, #tpu.memory_space<vmem>>, vector<64x1xi32>
    %2 = vector.broadcast %1 : vector<64x1xi32> to vector<64x64xi32>
    %3 = arith.cmpi eq, %0, %2 : vector<64x64xi32>
    %4 = arith.extui %3 : vector<64x64xi1> to vector<64x64xi32>
    %5 = arith.sitofp %4 : vector<64x64xi32> to vector<64x64xf32>
    %6 = arith.truncf %5 : vector<64x64xf32> to vector<64x64xbf16>
    %c0_1 = arith.constant 0 : index
    %c0_2 = arith.constant 0 : index
    %7 = vector.load %arg3[%c0_1, %c0_2] : memref<64x128xbf16, #tpu.memory_space<vmem>>, vector<64x128xbf16>
    %cst = arith.constant dense<0.000000e+00> : vector<64x128xf32>
    %8 = tpu.matmul %6, %7, %cst {dimension_numbers = #tpu.dot_dimension_numbers<[1], [0], [0], [1], [0, 0, 1, 1], [], []>} : vector<64x64xbf16>, vector<64x128xbf16>, vector<64x128xf32> -> vector<64x128xf32>
    %9 = arith.truncf %8 : vector<64x128xf32> to vector<64x128xbf16>
    %c0_3 = arith.constant 0 : index
    %c0_4 = arith.constant 0 : index
    %10 = vector.load %arg4[%c0_3, %c0_4] : memref<128x128xbf16, #tpu.memory_space<vmem>>, vector<128x128xbf16>
    %cst_5 = arith.constant dense<0.000000e+00> : vector<64x128xf32>
    %11 = tpu.matmul %9, %10, %cst_5 {dimension_numbers = #tpu.dot_dimension_numbers<[1], [0], [0], [1], [0, 0, 1, 1], [], []>} : vector<64x128xbf16>, vector<128x128xbf16>, vector<64x128xf32> -> vector<64x128xf32>
    %12 = tpu.iota {dimensions = array<i32: 1>} : vector<64x128xi32>
    %c0_6 = arith.constant 0 : index
    %c0_7 = arith.constant 0 : index
    %13 = vector.load %arg2[%c0_6, %c0_7] : memref<64x1xi32, #tpu.memory_space<vmem>>, vector<64x1xi32>
    %14 = vector.broadcast %13 : vector<64x1xi32> to vector<64x128xi32>
    %15 = arith.cmpi eq, %12, %14 : vector<64x128xi32>
    %16 = arith.extui %15 : vector<64x128xi1> to vector<64x128xi32>
    %17 = arith.sitofp %16 : vector<64x128xi32> to vector<64x128xf32>
    %18 = arith.truncf %17 : vector<64x128xf32> to vector<64x128xbf16>
    %c0_8 = arith.constant 0 : index
    %c0_9 = arith.constant 0 : index
    %19 = vector.load %arg5[%c0_8, %c0_9] : memref<128x128xbf16, #tpu.memory_space<vmem>>, vector<128x128xbf16>
    %cst_10 = arith.constant dense<0.000000e+00> : vector<64x128xf32>
    %20 = tpu.matmul %18, %19, %cst_10 {dimension_numbers = #tpu.dot_dimension_numbers<[1], [0], [0], [1], [0, 0, 1, 1], [], []>} : vector<64x128xbf16>, vector<128x128xbf16>, vector<64x128xf32> -> vector<64x128xf32>
    %21 = arith.addf %11, %20 : vector<64x128xf32>
    %c0_11 = arith.constant 0 : index
    %c0_12 = arith.constant 0 : index
    %22 = vector.load %arg6[%c0_11, %c0_12] : memref<128x128xbf16, #tpu.memory_space<vmem>>, vector<128x128xbf16>
    %cst_13 = arith.constant dense<0.000000e+00> : vector<64x128xf32>
    %23 = tpu.matmul %18, %22, %cst_13 {dimension_numbers = #tpu.dot_dimension_numbers<[1], [0], [0], [1], [0, 0, 1, 1], [], []>} : vector<64x128xbf16>, vector<128x128xbf16>, vector<64x128xf32> -> vector<64x128xf32>
    %24 = arith.addf %21, %23 : vector<64x128xf32>
    %cst_14 = arith.constant dense<0.000000e+00> : vector<64xf32>
    %25 = vector.multi_reduction <add>, %24, %cst_14 [1] : vector<64x128xf32> to vector<64xf32>
    %26 = vector.shape_cast %25 : vector<64xf32> to vector<64x1xf32>
    %cst_15 = arith.constant 3.125000e-02 : f32
    %27 = vector.broadcast %cst_15 : f32 to vector<64x1xf32>
    %28 = arith.mulf %26, %27 : vector<64x1xf32>
    %29 = vector.broadcast %28 : vector<64x1xf32> to vector<64x128xf32>
    %30 = arith.subf %24, %29 : vector<64x128xf32>
    %31 = arith.mulf %30, %30 : vector<64x128xf32>
    %cst_16 = arith.constant dense<0.000000e+00> : vector<64xf32>
    %32 = vector.multi_reduction <add>, %31, %cst_16 [1] : vector<64x128xf32> to vector<64xf32>
    %33 = vector.shape_cast %32 : vector<64xf32> to vector<64x1xf32>
    %34 = arith.mulf %28, %28 : vector<64x1xf32>
    %cst_17 = arith.constant 9.600000e+01 : f32
    %35 = vector.broadcast %cst_17 : f32 to vector<64x1xf32>
    %36 = arith.mulf %35, %34 : vector<64x1xf32>
    %37 = arith.subf %33, %36 : vector<64x1xf32>
    %cst_18 = arith.constant 3.125000e-02 : f32
    %38 = vector.broadcast %cst_18 : f32 to vector<64x1xf32>
    %39 = arith.mulf %37, %38 : vector<64x1xf32>
    %cst_19 = arith.constant 9.99999996E-13 : f32
    %40 = vector.broadcast %cst_19 : f32 to vector<64x1xf32>
    %41 = arith.addf %39, %40 : vector<64x1xf32>
    %42 = math.rsqrt %41 : vector<64x1xf32>
    %43 = vector.broadcast %42 : vector<64x1xf32> to vector<64x128xf32>
    %44 = arith.mulf %30, %43 : vector<64x128xf32>
    %c0_20 = arith.constant 0 : index
    %c0_21 = arith.constant 0 : index
    %45 = vector.load %arg7[%c0_20, %c0_21] : memref<1x128xf32, #tpu.memory_space<vmem>>, vector<1x128xf32>
    %46 = vector.broadcast %45 : vector<1x128xf32> to vector<64x128xf32>
    %47 = arith.mulf %44, %46 : vector<64x128xf32>
    %c0_22 = arith.constant 0 : index
    %c0_23 = arith.constant 0 : index
    %48 = vector.load %arg8[%c0_22, %c0_23] : memref<1x128xf32, #tpu.memory_space<vmem>>, vector<1x128xf32>
    %49 = vector.broadcast %48 : vector<1x128xf32> to vector<64x128xf32>
    %50 = arith.addf %47, %49 : vector<64x128xf32>
    %c0_24 = arith.constant 0 : index
    %c0_25 = arith.constant 0 : index
    %51 = vector.load %arg9[%c0_24, %c0_25] : memref<64x128xf32, #tpu.memory_space<vmem>>, vector<64x128xf32>
    tpu.vector_store %arg9[%c0_24, %c0_25], %50 {strides = array<i32>} : memref<64x128xf32, #tpu.memory_space<vmem>>, vector<64x128xf32>,
    return
  }
  func.func @transform_0(%arg0: i32) -> (i32, i32) {
    %c0_i32 = arith.constant 0 : i32
    %c0_i32_0 = arith.constant 0 : i32
    return %arg0, %c0_i32 : i32, i32
  }
  func.func @transform_1(%arg0: i32) -> (i32, i32) {
    %c0_i32 = arith.constant 0 : i32
    %c0_i32_0 = arith.constant 0 : i32
    return %arg0, %c0_i32 : i32, i32
  }
  func.func @transform_2(%arg0: i32) -> (i32, i32) {
    %c0_i32 = arith.constant 0 : i32
    %c0_i32_0 = arith.constant 0 : i32
    %c0_i32_1 = arith.constant 0 : i32
    return %c0_i32, %c0_i32_0 : i32, i32
  }
  func.func @transform_3(%arg0: i32) -> (i32, i32) {
    %c0_i32 = arith.constant 0 : i32
    %c0_i32_0 = arith.constant 0 : i32
    %c0_i32_1 = arith.constant 0 : i32
    return %c0_i32, %c0_i32_0 : i32, i32
  }
  func.func @transform_4(%arg0: i32) -> (i32, i32) {
    %c0_i32 = arith.constant 0 : i32
    %c0_i32_0 = arith.constant 0 : i32
    %c0_i32_1 = arith.constant 0 : i32
    return %c0_i32, %c0_i32_0 : i32, i32
  }
  func.func @transform_5(%arg0: i32) -> (i32, i32) {
    %c0_i32 = arith.constant 0 : i32
    %c0_i32_0 = arith.constant 0 : i32
    %c0_i32_1 = arith.constant 0 : i32
    return %c0_i32, %c0_i32_0 : i32, i32
  }
  func.func @transform_6(%arg0: i32) -> (i32, i32) {
    %c0_i32 = arith.constant 0 : i32
    %c0_i32_0 = arith.constant 0 : i32
    %c0_i32_1 = arith.constant 0 : i32
    return %c0_i32, %c0_i32_0 : i32, i32
  }
  func.func @transform_7(%arg0: i32) -> (i32, i32) {
    %c0_i32 = arith.constant 0 : i32
    %c0_i32_0 = arith.constant 0 : i32
    %c0_i32_1 = arith.constant 0 : i32
    return %c0_i32, %c0_i32_0 : i32, i32
  }
  func.func @transform_8(%arg0: i32) -> (i32, i32) {
    %c0_i32 = arith.constant 0 : i32
    %c0_i32_0 = arith.constant 0 : i32
    return %arg0, %c0_i32 : i32, i32
  }
}

</mosaic_0001>

<bundles_post_ra>
// kernel: tpu_custom_call.1
= control target key start
LH: loop header
LB: loop body
LE: loop exit
PB: predicated region body
PF: predicated region fallthrough
CT: control target
= control target key end

     0   :  { %13 = vsyncpa [#allocation3], 0  ;;  %s1949_s0 = inlined_call_operand.vmem [shape: s32[128,1], index: 0, kind: input, shape index: {}]   ;;  %s1950_s1 = inlined_call_operand.vmem [shape: s32[128,1], index: 1, kind: input, shape index: {}]   ;;  %s1951_s2 = inlined_call_operand.vmem [shape: bf16[64,128], index: 2, kind: input, shape index: {}]   ;;  %s1952_s3 = inlined_call_operand.vmem [shape: bf16[128,128], index: 3, kind: input, shape index: {}]   ;;  %s1953_s4 = inlined_call_operand.vmem [shape: bf16[128,128], index: 4, kind: input, shape index: {}]   ;;  %s1954_s5 = inlined_call_operand.vmem [shape: bf16[128,128], index: 5, kind: input, shape index: {}]   ;;  %s1955_s6 = inlined_call_operand.vmem [shape: f32[1,128], index: 6, kind: input, shape index: {}]   ;;  %s1956_s7 = inlined_call_operand.vmem [shape: f32[1,128], index: 7, kind: input, shape index: {}]   ;;  %s1957_s8 = inlined_call_operand.hbm [shape: f32[128,128], index: 8, kind: output, shape index: {}]  }
   0x1   :  { %15 = vsyncpa [#allocation3 + $0x1], 0  ;;  %s1633_s27 = smov 0   ;;  %s1635_s28 = smov 0  }
   0x2   :  { %s1637_s29 = smov 0   ;;  %s1639_s30 = smov 0  }
   0x3 LB: > { %s1654_s9 = sadd.s32 4294967295, %s1580_s30   ;;  %s1199_s10 = sadd.s32 4294967294, %s1580_s30   ;;  %s1580_s30 = sphi %s1639_s30, %s1971_s30   ;;  %s1576_s29 = sphi %s1637_s29, %s1970_s29   ;;  %s1572_s28 = sphi %s1635_s28, %s1969_s28   ;;  %s1568_s27 = sphi %s1633_s27, %s1968_s27  }
   0x4   : > { %s1658_s11 = sadd.s32 1, %s1580_s30   ;;  %s206_s12 = sadd.s32 1, %s1576_s29 }
   0x5   : > { %s203_s13 = ssub.s32 %s1580_s30, %s1658_s11  ;;  %p216_p0 = scmp.ne.s32.totalorder %s1576_s29, %s1572_s28 }
   0x6   : > { %p204_p1 = scmp.eq.s32.totalorder %s203_s13, 0  ;;  %p217_p2 = scmp.eq.s32.totalorder %s1654_s9, 1 }
   0x7   : > { %p222_p3 = scmp.ne.s32.totalorder %s1572_s28, %s1568_s27  ;;  %p223_p4 = scmp.eq.s32.totalorder %s1199_s10, 1 }
   0x8   : > { %s1669_s14 = scalar_select %p204_p1, %s1576_s29, %s206_s12  }
   0x9   : > { %p1671_p5 = por %p217_p2, %p216_p0  ;;  %p1675_p6 = por %p223_p4, %p222_p3 }
   0xa   : > { %p1202_p7 = scmp.ge.s32.totalorder %s1580_s30, 1  ;;  %p277_p8 = scmp.lt.s32.totalorder %s1580_s30, 3 }
   0xc   : > { %p278_p9 = pnand %p1202_p7, %p277_p8 }
   0xd   : > { %s1204_s17 = sshll.u32 (!%p278_p9), %s1654_s9, 3  ;;  %v1582_v0 = vmov (!%p278_p9), 0   ;;  %v1474_v1 = vld [vmem:[%s1951_s2] sm:$0xff] (!%p278_p9)   ;;  %v1475_v2 = vld [vmem:[%s1951_s2 + $0x8] sm:$0xff] (!%p278_p9)   ;;  %v1476_v3 = vld [vmem:[%s1951_s2 + $0x10] sm:$0xff] (!%p278_p9)   ;;  %v330_v29 = vlaneseq (!%p278_p9)  ;;  %vm424_vm4 = vcmask (!%p278_p9), 523264  }
   0xe   : > { %281 = sbr.rel (%p278_p9) target bundleno = 974 (0x3ce), region = 52  ;;  %1473 = vset.pattern.permute.xlu1 (!%p278_p9), %v1582_v0  ;;  %1472 = vset.pattern.permute.xlu0 (!%p278_p9), %v1582_v0  ;;  %p317_p10 = scmp.lt.s32.totalorder (!%p278_p9), %s1204_s17, 15  ;;  %v1477_v10 = vld [vmem:[%s1951_s2 + $0x18] sm:$0xff] (!%p278_p9)   ;;  %v1700_v11 = vld [vmem:[%s1953_s4] sm:$0xff] (!%p278_p9)   ;;  %v1487_v23 = vld [vmem:[%s1952_s3 + $0x8] sm:$0xff] (!%p278_p9)   ;;  %v1583_v35 = vmov (!%p278_p9), 0.0  }
   0xf   : > { %1324 = vmatprep.subr.bf16.mxu0 (!%p278_p9), %v1474_v1  ;;  %v1486_v22 = vld [vmem:[%s1952_s3] sm:$0xff] (!%p278_p9)   ;;  %v1488_v24 = vld [vmem:[%s1952_s3 + $0x10] sm:$0xff] (!%p278_p9)   ;;  %v1489_v25 = vld [vmem:[%s1952_s3 + $0x18] sm:$0xff] (!%p278_p9)   ;;  %v1727_v30 = vand.u32 (!%p278_p9), 127, %v330_v29  ;;  %v1584_v58 = vmov (!%p278_p9), 1.0|1.0  }
  0x10   : > { %1325 = vmatpush3.bf16.msra.mxu0 (!%p278_p9), %v1474_v1  ;;  %1364 = vmatprep.subr.bf16.mxu1 (!%p278_p9), %v1486_v22  ;;  %v1490_v26 = vld [vmem:[%s1952_s3 + $0x20] sm:$0xff] (!%p278_p9)   ;;  %v1491_v27 = vld [vmem:[%s1952_s3 + $0x28] sm:$0xff] (!%p278_p9)   ;;  %v1492_v28 = vld [vmem:[%s1952_s3 + $0x30] sm:$0xff] (!%p278_p9)   ;;  %s313_s13 = sand.u32 (!%p278_p9), 1, %s1572_s28   ;;  %s1279_s23 = sshll.u32 (!%p278_p9), %s1654_s9, 10 }
  0x11   : > { %1326 = vmatprep.subr.bf16.mxu0 (!%p278_p9), %v1475_v2  ;;  %1365 = vmatpush3.bf16.msra.mxu1 (!%p278_p9), %v1486_v22  ;;  %v1479_v44 = vld [vmem:[%s1953_s4 + $0x8] sm:$0xff] (!%p278_p9)   ;;  %v1480_v50 = vld [vmem:[%s1953_s4 + $0x10] sm:$0xff] (!%p278_p9)   ;;  %v1481_v56 = vld [vmem:[%s1953_s4 + $0x18] sm:$0xff] (!%p278_p9)   ;;  %s1203_s19 = sshll.u32 (!%p278_p9), %s313_s13, 6  ;;  %s1901_s10 = scalar_lea.hbm (!%p278_p9), %s1957_s8, %s1279_s23 }
  0x12   : > { %1366 = vmatprep.subr.bf16.mxu1 (!%p278_p9), %v1487_v23  ;;  %v1482_v59 = vld [vmem:[%s1953_s4 + $0x20] sm:$0xff] (!%p278_p9)   ;;  %v1483_v60 = vld [vmem:[%s1953_s4 + $0x28] sm:$0xff] (!%p278_p9)   ;;  %v1484_v61 = vld [vmem:[%s1953_s4 + $0x30] sm:$0xff] (!%p278_p9)   ;;  %s1908_s12 = scalar_lea.sflag (!%p278_p9), [#allocation3], %s313_s13  ;;  %s1585_s9 = smov (!%p278_p9), [#allocation2]  }
  0x13   : > { %v1485_v0 = vld [vmem:[%s1953_s4 + $0x38] sm:$0xff] (!%p278_p9)   ;;  %s1522_s18 = sshll.u32 (!%p278_p9), %s1585_s9, 4  ;;  %s1523_s18 = int_to_ptr.vmem [resolvable:$false] %s1522_s18 }
  0x14   : > { %1327 = vmatpush3.bf16.msra.mxu0 (!%p278_p9), %v1475_v2 }
  0x15   : > { %s1973_s17 = smov (!%p317_p10, %s1204_s17), 15  ;;  %1328 = vmatprep.subr.bf16.mxu0 %v1476_v3  ;;  %1367 = vmatpush3.bf16.msra.mxu1 %v1487_v23 }
  0x16   : > { %s1205_s22 = sshll.u32 %s1973_s17, 3  ;;  %1368 = vmatprep.subr.bf16.mxu1 %v1488_v24 }
  0x17   : > { %s320_s25 = scalar_lea.vmem %s1949_s0, %s1205_s22  ;;  %s326_s21 = scalar_lea.vmem %s1950_s1, %s1205_s22 }
  0x18   : > { %v334_v4 = vld [vmem:[%s320_s25 + $0x10] sm:$0xff]  ;;  %v332_v5 = vld [vmem:[%s320_s25] sm:$0xff]  ;;  %v335_v6 = vld [vmem:[%s320_s25 + $0x18] sm:$0xff]  ;;  %1329 = vmatpush3.bf16.msra.mxu0 %v1476_v3  ;;  %s1881_s22 = scalar_lea.vmem [#allocation2], %s1203_s19  ;;  %s1524_s19 = scalar_lea.vmem %s1523_s18, 2048 }
  0x19   : > { %347 = vperm.xlu1 %1473, %v334_v4   ;;  %341 = vperm.xlu0 %1472, %v332_v5   ;;  %v333_v7 = vld [vmem:[%s320_s25 + $0x8] sm:$0xff]  ;;  %v336_v9 = vld [vmem:[%s320_s25 + $0x20] sm:$0xff]  ;;  %v339_v12 = vld [vmem:[%s320_s25 + $0x38] sm:$0xff]  ;;  %s1125_s24 = sshll.u32 %s1881_s22, 4  ;;  %s1903_s24 = int_to_ptr.vmem [resolvable:$true] %s1125_s24 }
  0x1a   : > { %v337_v8 = vld [vmem:[%s320_s25 + $0x28] sm:$0xff]  ;;  %1330 = vmatprep.subr.bf16.mxu0 %v1477_v10  ;;  %v338_v13 = vld [vmem:[%s320_s25 + $0x30] sm:$0xff]  ;;  %v522_v15 = vld [vmem:[%s326_s21] sm:$0xff]  ;;  %1369 = vmatpush3.bf16.msra.mxu1 %v1488_v24  ;;  %s1518_s17 = scalar_lea.vmem %s1903_s24, 1024  ;;  %p1525_p0 = scmp.lt.s32.totalorder %s1903_s24, %s1523_s18 }
  0x1b   : > { %v523_v14 = vld [vmem:[%s326_s21 + $0x8] sm:$0xff]  ;;  %v525_v16 = vld [vmem:[%s326_s21 + $0x18] sm:$0xff]  ;;  %v524_v17 = vld [vmem:[%s326_s21 + $0x10] sm:$0xff]  ;;  %1370 = vmatprep.subr.bf16.mxu1 %v1489_v25  ;;  %p1519_p11 = scmp.ne.s32.totalorder %s1903_s24, %s1518_s17  ;;  %p1526_p1 = scmp.lt.s32.totalorder %s1524_s19, %s1518_s17 }
  0x1c   : > { %1331 = vmatpush3.bf16.msra.mxu0 %v1477_v10  ;;  %v527_v18 = vld [vmem:[%s326_s21 + $0x28] sm:$0xff]  ;;  %v526_v19 = vld [vmem:[%s326_s21 + $0x20] sm:$0xff]  ;;  %v529_v20 = vld [vmem:[%s326_s21 + $0x38] sm:$0xff] }
  0x1d   : > { %350 = vperm.xlu1 %1473, %v335_v6   ;;  %344 = vperm.xlu0 %1472, %v333_v7   ;;  %v528_v21 = vld [vmem:[%s326_s21 + $0x30] sm:$0xff]  ;;  %v1497_v24 = vld [vmem:[%s1954_s5 + $0x18] sm:$0xff]   ;;  %p1520_p12 = pnand %p1519_p11, %p1671_p5  ;;  %p1527_p2 = por %p1526_p1, %p1525_p0 }
  0x1e   : > { %1340 = vmatprep.subr.bf16.mxu0 %v1700_v11  ;;  %1371 = vmatpush3.bf16.msra.mxu1 %v1489_v25  ;;  %v1498_v25 = vld [vmem:[%s1954_s5 + $0x20] sm:$0xff]  }
  0x1f   : > { %1372 = vmatprep.subr.bf16.mxu1 %v1490_v26  ;;  %p1521_p13 = pneg %p1520_p12 }
  0x21   : > { %356 = vperm.xlu1 %1473, %v337_v8   ;;  %353 = vperm.xlu0 %1472, %v336_v9   ;;  %v1493_v8 = vld [vmem:[%s1952_s3 + $0x38] sm:$0xff]   ;;  %v1494_v9 = vld [vmem:[%s1954_s5] sm:$0xff]   ;;  %p1528_p3 = pnand %p1527_p2, %p1521_p13 }
  0x22   : > { %1373 = vmatpush3.bf16.msra.mxu1 %v1490_v26  ;;  %v1499_v26 = vld [vmem:[%s1954_s5 + $0x28] sm:$0xff]  }
  0x23   : > { %1374 = vmatprep.subr.bf16.mxu1 %v1491_v27 }
  0x25   : > { %362 = vperm.xlu1 %1473, %v339_v12   ;;  %359 = vperm.xlu0 %1472, %v338_v13  }
  0x26   : > { %1375 = vmatpush3.bf16.msra.mxu1 %v1491_v27  ;;  %v1500_v27 = vld [vmem:[%s1954_s5 + $0x30] sm:$0xff]  }
  0x27   : > { %1376 = vmatprep.subr.bf16.mxu1 %v1492_v28 }
  0x29   : > { %534 = vperm.xlu1 %1473, %v523_v14   ;;  %531 = vperm.xlu0 %1472, %v522_v15  }
  0x2a   : > { %1377 = vmatpush3.bf16.msra.mxu1 %v1492_v28  ;;  %v1501_v28 = vld [vmem:[%s1954_s5 + $0x38] sm:$0xff]  }
  0x2b   : > { %1378 = vmatprep.subr.bf16.mxu1 %v1493_v8 }
  0x2d   : > { %540 = vperm.xlu1 %1473, %v525_v16   ;;  %537 = vperm.xlu0 %1472, %v524_v17   ;;  %v1495_v16 = vld [vmem:[%s1954_s5 + $0x8] sm:$0xff]  }
  0x2e   : > { %1379 = vmatpush3.bf16.msra.mxu1 %v1493_v8 }
  0x2f   : > { %1388 = vmatprep.subr.bf16.mxu1 %v1494_v9 }
  0x31   : > { %546 = vperm.xlu1 %1473, %v527_v18   ;;  %543 = vperm.xlu0 %1472, %v526_v19   ;;  %v1496_v19 = vld [vmem:[%s1954_s5 + $0x10] sm:$0xff]  }
  0x35   : > { %552 = vperm.xlu1 %1473, %v529_v20   ;;  %549 = vperm.xlu0 %1472, %v528_v21  }
  0x98   : > { %v348_v31 = vpop.permute.xlu1 %347  ;;  %v342_v32 = vpop.permute.xlu0 %341 }
  0x99   : > { %vm366_vm0 = vcmp.eq.s32.totalorder %v1727_v30, %v348_v31  ;;  %vm364_vm1 = vcmp.eq.s32.totalorder %v1727_v30, %v342_v32 }
  0x9a   : > { %v1210_v36 = vsel %vm366_vm0, 1.0, %v1583_v35  ;;  %v1208_v37 = vsel %vm364_vm1, 1.0, %v1583_v35 }
  0x9c   : > { %v351_v33 = vpop.permute.xlu1 %350  ;;  %v345_v34 = vpop.permute.xlu0 %344 }
  0x9d   : > { %vm367_vm2 = vcmp.eq.s32.totalorder %v1727_v30, %v351_v33  ;;  %vm365_vm3 = vcmp.eq.s32.totalorder %v1727_v30, %v345_v34 }
  0x9e   : > { %v1211_v38 = vsel %vm367_vm2, 1.0, %v1583_v35  ;;  %v1209_v39 = vsel %vm365_vm3, 1.0, %v1583_v35 }
  0x9f   : > { %v389_v40 = vpack.c.bf16 %v1211_v38, %v1210_v36  ;;  %v388_v41 = vpack.c.bf16 %v1209_v39, %v1208_v37 }
  0xa0   : > { %v357_v42 = vpop.permute.xlu1 %356  ;;  %v354_v43 = vpop.permute.xlu0 %353 }
  0xa1   : > { %vm369_vm5 = vcmp.eq.s32.totalorder %v1727_v30, %v357_v42  ;;  %vm368_vm6 = vcmp.eq.s32.totalorder %v1727_v30, %v354_v43  ;;  %1332 = vmatprep.mubr.msk.bf16.mxu0 %vm424_vm4, %v388_v41 }
  0xa2   : > { %v1213_v45 = vsel %vm369_vm5, 1.0, %v1583_v35  ;;  %v1212_v46 = vsel %vm368_vm6, 1.0, %v1583_v35  ;;  %1333 = vmatmul.mubr.msk.bf16.vlgmr.msra.gmra.mrb[0].mxu0 %vm424_vm4, %v389_v40 }
  0xa3   : > { %v390_v47 = vpack.c.bf16 %v1213_v45, %v1212_v46  ;;  %1341 = vmatpush3.bf16.msra.mxu0 %v1700_v11 }
  0xa4   : > { %v363_v48 = vpop.permute.xlu1 %362  ;;  %v360_v49 = vpop.permute.xlu0 %359  ;;  %1342 = vmatprep.subr.bf16.mxu0 %v1479_v44 }
  0xa5   : > { %vm371_vm7 = vcmp.eq.s32.totalorder %v1727_v30, %v363_v48  ;;  %vm370_vm8 = vcmp.eq.s32.totalorder %v1727_v30, %v360_v49  ;;  %1336 = vmatprep.mubr.msk.bf16.mxu0 %vm424_vm4, %v390_v47 }
  0xa6   : > { %v1215_v51 = vsel %vm371_vm7, 1.0, %v1583_v35  ;;  %v1214_v52 = vsel %vm370_vm8, 1.0, %v1583_v35 }
  0xa7   : > { %v391_v53 = vpack.c.bf16 %v1215_v51, %v1214_v52  ;;  %1343 = vmatpush3.bf16.msra.mxu0 %v1479_v44 }
  0xa8   : > { %v535_v54 = vpop.permute.xlu1 %534  ;;  %v532_v55 = vpop.permute.xlu0 %531  ;;  %1344 = vmatprep.subr.bf16.mxu0 %v1480_v50 }
  0xa9   : > { %vm555_vm9 = vcmp.eq.s32.totalorder %v1727_v30, %v535_v54  ;;  %vm554_vm10 = vcmp.eq.s32.totalorder %v1727_v30, %v532_v55 }
  0xaa   : > { %vm1752_vm11 = vmpackc.low %vm555_vm9, %vm554_vm10  ;;  %1337 = vmatmul.mubr.msk.bf16.gmra.mrb[4].mxu0 %vm424_vm4, %v391_v53 }
  0xab   : > { %1345 = vmatpush3.bf16.msra.mxu0 %v1480_v50  ;;  %1356 = vmatprep.mubr.msk.bf16.mxu0 %vm1752_vm11, %v1584_v58 }
  0xac   : > { %1346 = vmatprep.subr.bf16.mxu0 %v1481_v56  ;;  %v541_v62 = vpop.permute.xlu1 %540  ;;  %v538_v63 = vpop.permute.xlu0 %537 }
  0xad   : > { %vm557_vm12 = vcmp.eq.s32.totalorder %v1727_v30, %v541_v62  ;;  %vm556_vm13 = vcmp.eq.s32.totalorder %v1727_v30, %v538_v63 }
  0xae   : > { %vm1776_vm0 = vmpackc.low %vm557_vm12, %vm556_vm13 }
  0xaf   : > { %1347 = vmatpush3.bf16.msra.mxu0 %v1481_v56 }
  0xb0   : > { %1348 = vmatprep.subr.bf16.mxu0 %v1482_v59  ;;  %v547_v1 = vpop.permute.xlu1 %546  ;;  %v544_v2 = vpop.permute.xlu0 %543 }
  0xb1   : > { %vm559_vm14 = vcmp.eq.s32.totalorder %v1727_v30, %v547_v1  ;;  %vm558_vm15 = vcmp.eq.s32.totalorder %v1727_v30, %v544_v2 }
  0xb2   : > { %vm1780_vm1 = vmpackc.low %vm559_vm14, %vm558_vm15 }
  0xb3   : > { %1349 = vmatpush3.bf16.msra.mxu0 %v1482_v59 }
  0xb4   : > { %1350 = vmatprep.subr.bf16.mxu0 %v1483_v60  ;;  %v553_v5 = vpop.permute.xlu1 %552  ;;  %v550_v6 = vpop.permute.xlu0 %549 }
  0xb5   : > { %vm561_vm2 = vcmp.eq.s32.totalorder %v1727_v30, %v553_v5  ;;  %vm560_vm3 = vcmp.eq.s32.totalorder %v1727_v30, %v550_v6 }
  0xb6   : > { %vm1792_vm4 = vmpackc.low %vm561_vm2, %vm560_vm3 }
  0xb7   : > { %1351 = vmatpush3.bf16.msra.mxu0 %v1483_v60 }
  0xb8   : > { %1352 = vmatprep.subr.bf16.mxu0 %v1484_v61 }
  0xbb   : > { %1353 = vmatpush3.bf16.msra.mxu0 %v1484_v61 }
  0xbc   : > { %1354 = vmatprep.subr.bf16.mxu0 %v1485_v0 }
  0xbf   : > { %1355 = vmatpush3.bf16.msra.mxu0 %v1485_v0 }
  0xc2   : > { %1357 = vmatmul.mubr.msk.bf16.vlgmr.msra.gmra.mrb[8].mxu0 %vm1776_vm0, %v1584_v58 }
  0xc3   : > { %1360 = vmatprep.mubr.msk.bf16.mxu0 %vm1780_vm1, %v1584_v58 }
  0xca   : > { %1361 = vmatmul.mubr.msk.bf16.gmra.mrb[12].mxu0 %vm1792_vm4, %v1584_v58 }
 0x175   : > { %v1334_v10 = vpop.f32.mrb[0].mxu0 }
 0x176   : > { %v471_v11 = vpop.f32.mrb[1].mxu0 }
 0x177   : > { %v1335_v12 = vpop.f32.mrb[2].mxu0 }
 0x178   : > { %v503_v13 = vpack.c.bf16 %v1335_v12, %v1334_v10  ;;  %v474_v14 = vpop.f32.mrb[3].mxu0 }
 0x179   : > { %v502_v15 = vpack.c.bf16 %v474_v14, %v471_v11 }
 0x17b   : > { %1380 = vmatprep.mubr.bf16.mxu1 %v502_v15 }
 0x17c   : > { %1381 = vmatmul.mubr.bf16.vlgmr.msra.gmra.mrb[0].mxu1 %v503_v13 }
 0x17d   : > { %1389 = vmatpush3.bf16.msra.mxu1 %v1494_v9  ;;  %v1338_v17 = vpop.f32.mrb[4].mxu0 }
 0x17e   : > { %v487_v18 = vpop.f32.mrb[5].mxu0  ;;  %1390 = vmatprep.subr.bf16.mxu1 %v1495_v16 }
 0x17f   : > { %v1339_v20 = vpop.f32.mrb[6].mxu0 }
 0x180   : > { %v505_v21 = vpack.c.bf16 %v1339_v20, %v1338_v17  ;;  %v490_v22 = vpop.f32.mrb[7].mxu0 }
 0x181   : > { %v504_v23 = vpack.c.bf16 %v490_v22, %v487_v18  ;;  %1391 = vmatpush3.bf16.msra.mxu1 %v1495_v16 }
 0x182   : > { %1392 = vmatprep.subr.bf16.mxu1 %v1496_v19 }
 0x183   : > { %1384 = vmatprep.mubr.bf16.mxu1 %v504_v23 }
 0x184   : > { %1385 = vmatmul.mubr.bf16.gmra.mrb[4].mxu1 %v505_v21 }
 0x185   : > { %1393 = vmatpush3.bf16.msra.mxu1 %v1496_v19  ;;  %1404 = vmatprep.mubr.msk.bf16.mxu1 %vm1752_vm11, %v1584_v58 }
 0x186   : > { %1394 = vmatprep.subr.bf16.mxu1 %v1497_v24 }
 0x189   : > { %1395 = vmatpush3.bf16.msra.mxu1 %v1497_v24 }
 0x18a   : > { %1396 = vmatprep.subr.bf16.mxu1 %v1498_v25 }
 0x18d   : > { %1397 = vmatpush3.bf16.msra.mxu1 %v1498_v25 }
 0x18e   : > { %1398 = vmatprep.subr.bf16.mxu1 %v1499_v26 }
 0x191   : > { %1399 = vmatpush3.bf16.msra.mxu1 %v1499_v26 }
 0x192   : > { %1400 = vmatprep.subr.bf16.mxu1 %v1500_v27 }
 0x195   : > { %v1358_v29 = vpop.f32.mrb[8].mxu0  ;;  %1401 = vmatpush3.bf16.msra.mxu1 %v1500_v27 }
 0x196   : > { %v680_v30 = vpop.f32.mrb[9].mxu0  ;;  %1402 = vmatprep.subr.bf16.mxu1 %v1501_v28 }
 0x197   : > { %v1359_v31 = vpop.f32.mrb[10].mxu0 }
 0x198   : > { %v683_v32 = vpop.f32.mrb[11].mxu0 }
 0x199   : > { %1403 = vmatpush3.bf16.msra.mxu1 %v1501_v28 }
 0x19c   : > { %1405 = vmatmul.mubr.msk.bf16.vlgmr.msra.gmra.mrb[0].mxu1 %vm1776_vm0, %v1584_v58 }
 0x19d   : > { %v1362_v33 = vpop.f32.mrb[12].mxu0  ;;  %1408 = vmatprep.mubr.msk.bf16.mxu1 %vm1780_vm1, %v1584_v58 }
 0x19e   : > { %v696_v34 = vpop.f32.mrb[13].mxu0 }
 0x19f   : > { %v1363_v35 = vpop.f32.mrb[14].mxu0 }
 0x1a0   : > { %v699_v36 = vpop.f32.mrb[15].mxu0 }
 0x1a4   : > { %1409 = vmatmul.mubr.msk.bf16.gmra.mrb[4].mxu1 %vm1792_vm4, %v1584_v58 }
 0x26f   : > { %v1406_v37 = vpop.f32.mrb[0].mxu1 }
 0x270   : > { %v1412_v38 = vadd.f32 %v1406_v37, %v1358_v29  ;;  %v922_v39 = vpop.f32.mrb[1].mxu1 }
 0x271   : > { %v1413_v40 = vadd.f32 %v922_v39, %v680_v30  ;;  %v1407_v41 = vpop.f32.mrb[2].mxu1 }
 0x272   : > { %v1414_v42 = vadd.f32 %v1407_v41, %v1359_v31  ;;  %v925_v43 = vpop.f32.mrb[3].mxu1  ;;  %965 = vadd.xlane.f32.xlu0 %v1412_v38 }
 0x273   : > { %v1415_v44 = vadd.f32 %v925_v43, %v683_v32 }
 0x275   : > { %963 = vadd.xlane.f32.xlu1 %v1415_v44 }
 0x276   : > { %961 = vadd.xlane.f32.xlu0 %v1413_v40 }
 0x277   : > { %v1410_v45 = vpop.f32.mrb[4].mxu1 }
 0x278   : > { %v1416_v46 = vadd.f32 %v1410_v45, %v1362_v33  ;;  %v938_v47 = vpop.f32.mrb[5].mxu1 }
 0x279   : > { %v1417_v48 = vadd.f32 %v938_v47, %v696_v34  ;;  %v1411_v49 = vpop.f32.mrb[6].mxu1 }
 0x27a   : > { %v1418_v50 = vadd.f32 %v1411_v49, %v1363_v35  ;;  %967 = vadd.xlane.f32.xlu0 %v1414_v42  ;;  %v941_v51 = vpop.f32.mrb[7].mxu1 }
 0x27b   : > { %v1419_v52 = vadd.f32 %v941_v51, %v699_v36  ;;  %969 = vadd.xlane.f32.xlu1 %v1417_v48 }
 0x27e   : > { %971 = vadd.xlane.f32.xlu0 %v1419_v52 }
 0x27f   : > { %973 = vadd.xlane.f32.xlu1 %v1416_v46 }
 0x282   : > { %975 = vadd.xlane.f32.xlu0 %v1418_v50 }
 0x2ff   : > { %v966_v53 = vpop.xlane.xlu0 %965 }
 0x300   : > { %v979_v54 = vmul.f32 0.03125, %v966_v53 }
 0x302   : > { %v1838_v55 = vsub.f32 %v1412_v38, %v979_v54  ;;  %v964_v57 = vpop.xlane.xlu1 %963  ;;  %v1019_v21 = vmul.f32 %v979_v54, %v979_v54 }
 0x303   : > { %v962_v56 = vpop.xlane.xlu0 %961  ;;  %v978_v62 = vmul.f32 0.03125, %v964_v57 }
 0x304   : > { %v977_v58 = vmul.f32 0.03125, %v962_v56  ;;  %v995_v59 = vmul.f32 %v1838_v55, %v1838_v55  ;;  %v1027_v23 = vmul.f32 96.0, %v1019_v21 }
 0x305   : > { %v1850_v6 = vsub.f32 %v1415_v44, %v978_v62  ;;  %v1018_v33 = vmul.f32 %v978_v62, %v978_v62  ;;  %v1272_v62 = vld [vmem:[%s1955_s6] ss:$0 sm:$0xff] }
 0x306   : > { %v1842_v60 = vsub.f32 %v1413_v40, %v977_v58  ;;  %1005 = vadd.xlane.f32.xlu1 %v995_v59  ;;  %v1017_v22 = vmul.f32 %v977_v58, %v977_v58 }
 0x307   : > { %v968_v61 = vpop.xlane.xlu0 %967  ;;  %v994_v16 = vmul.f32 %v1850_v6, %v1850_v6  ;;  %v1026_v45 = vmul.f32 96.0, %v1018_v33 }
 0x308   : > { %v980_v63 = vmul.f32 0.03125, %v968_v61  ;;  %v970_v0 = vpop.xlane.xlu1 %969  ;;  %v993_v1 = vmul.f32 %v1842_v60, %v1842_v60  ;;  %v1025_v28 = vmul.f32 96.0, %v1017_v22 }
 0x309   : > { %v981_v2 = vmul.f32 0.03125, %v970_v0 }
 0x30a   : > { %v1846_v3 = vsub.f32 %v1414_v42, %v980_v63  ;;  %1001 = vadd.xlane.f32.xlu1 %v993_v1  ;;  %v1020_v26 = vmul.f32 %v980_v63, %v980_v63 }
 0x30b   : > { %v1848_v4 = vsub.f32 %v1417_v48, %v981_v2  ;;  %v972_v5 = vpop.xlane.xlu0 %971  ;;  %v1021_v29 = vmul.f32 %v981_v2, %v981_v2 }
 0x30c   : > { %v982_v7 = vmul.f32 0.03125, %v972_v5  ;;  %v974_v8 = vpop.xlane.xlu1 %973  ;;  %v996_v9 = vmul.f32 %v1846_v3, %v1846_v3  ;;  %v1028_v35 = vmul.f32 96.0, %v1020_v26  ;;  %v1273_v5 = vld [vmem:[%s1956_s7] ss:$0 sm:$0xff] }
 0x30d   : > { %v983_v10 = vmul.f32 0.03125, %v974_v8  ;;  %v997_v11 = vmul.f32 %v1848_v4, %v1848_v4  ;;  %v1029_v38 = vmul.f32 96.0, %v1021_v29 }
 0x30e   : > { %1007 = vadd.xlane.f32.xlu0 %v996_v9  ;;  %v1858_v14 = vsub.f32 %v1419_v52, %v982_v7  ;;  %v1022_v43 = vmul.f32 %v982_v7, %v982_v7 }
 0x30f   : > { %v1856_v12 = vsub.f32 %v1416_v46, %v983_v10  ;;  %1009 = vadd.xlane.f32.xlu1 %v997_v11  ;;  %v976_v13 = vpop.xlane.xlu0 %975  ;;  %v1023_v36 = vmul.f32 %v983_v10, %v983_v10 }
 0x310   : > { %v984_v15 = vmul.f32 0.03125, %v976_v13  ;;  %v998_v19 = vmul.f32 %v1858_v14, %v1858_v14  ;;  %v1030_v57 = vmul.f32 96.0, %v1022_v43 }
 0x311   : > { %v999_v17 = vmul.f32 %v1856_v12, %v1856_v12  ;;  %v1031_v48 = vmul.f32 96.0, %v1023_v36 }
 0x312   : > { %1003 = vadd.xlane.f32.xlu0 %v994_v16  ;;  %v1864_v18 = vsub.f32 %v1418_v50, %v984_v15  ;;  %v1024_v54 = vmul.f32 %v984_v15, %v984_v15 }
 0x313   : > { %1013 = vadd.xlane.f32.xlu1 %v999_v17 }
 0x314   : > { %v1000_v20 = vmul.f32 %v1864_v18, %v1864_v18  ;;  %v1032_v8 = vmul.f32 96.0, %v1024_v54 }
 0x316   : > { %1011 = vadd.xlane.f32.xlu0 %v998_v19 }
 0x31a   : > { %1015 = vadd.xlane.f32.xlu0 %v1000_v20 }
 0x393   : > { %v1006_v24 = vpop.xlane.xlu1 %1005 }
 0x394   : > { %v1035_v25 = vsub.f32 %v1006_v24, %v1027_v23 }
 0x396   : > { %v1043_v27 = vmul.f32 0.03125, %v1035_v25 }
 0x397   : > { %v1002_v30 = vpop.xlane.xlu1 %1001 }
 0x398   : > { %v1051_v31 = vadd.f32 1e-12, %v1043_v27  ;;  %v1033_v32 = vsub.f32 %v1002_v30, %v1025_v28 }
 0x39a   : > { %1502 = vrsqrt.f32 %v1051_v31  ;;  %v1041_v34 = vmul.f32 0.03125, %v1033_v32 }
 0x39b   : > { %v1008_v37 = vpop.xlane.xlu0 %1007 }
 0x39c   : > { %v1049_v39 = vadd.f32 1e-12, %v1041_v34  ;;  %v1036_v40 = vsub.f32 %v1008_v37, %v1028_v35  ;;  %v1010_v41 = vpop.xlane.xlu1 %1009 }
 0x39d   : > { %v1037_v42 = vsub.f32 %v1010_v41, %v1029_v38 }
 0x39e   : > { %1504 = vrsqrt.f32 %v1049_v39  ;;  %v1044_v44 = vmul.f32 0.03125, %v1036_v40 }
 0x39f   : > { %v1045_v46 = vmul.f32 0.03125, %v1037_v42  ;;  %v1004_v47 = vpop.xlane.xlu0 %1003 }
 0x3a0   : > { %v1052_v49 = vadd.f32 1e-12, %v1044_v44  ;;  %v1034_v50 = vsub.f32 %v1004_v47, %v1026_v45  ;;  %v1014_v51 = vpop.xlane.xlu1 %1013 }
 0x3a1   : > { %v1053_v52 = vadd.f32 1e-12, %v1045_v46  ;;  %v1039_v53 = vsub.f32 %v1014_v51, %v1031_v48 }
 0x3a2   : > { %1506 = vrsqrt.f32 %v1052_v49  ;;  %v1042_v56 = vmul.f32 0.03125, %v1034_v50 }
 0x3a3   : > { %1508 = vrsqrt.f32 %v1053_v52  ;;  %v1047_v58 = vmul.f32 0.03125, %v1039_v53  ;;  %v1012_v59 = vpop.xlane.xlu0 %1011 }
 0x3a4   : > { %v1503_v61 = vpop.eup %1502  ;;  %v1050_v63 = vadd.f32 1e-12, %v1042_v56  ;;  %v1038_v0 = vsub.f32 %v1012_v59, %v1030_v57 }
 0x3a5   : > { %v1067_v1 = vmul.f32 %v1503_v61, %v1838_v55  ;;  %v1055_v2 = vadd.f32 1e-12, %v1047_v58 }
 0x3a6   : > { %1510 = vrsqrt.f32 %v1050_v63  ;;  %v1046_v7 = vmul.f32 0.03125, %v1038_v0 }
 0x3a7   : > { %v1082_v9 = vmul.f32 %v1272_v62, %v1067_v1  ;;  %1512 = vrsqrt.f32 %v1055_v2  ;;  %v1016_v10 = vpop.xlane.xlu0 %1015 }
 0x3a8   : > { %v1505_v11 = vpop.eup %1504  ;;  %v1054_v13 = vadd.f32 1e-12, %v1046_v7  ;;  %v1040_v15 = vsub.f32 %v1016_v10, %v1032_v8 }
 0x3a9   : > { %v1097_v16 = vadd.f32 %v1273_v5, %v1082_v9  ;;  %v1065_v17 = vmul.f32 %v1505_v11, %v1842_v60 }
 0x3aa   : > { %1514 = vrsqrt.f32 %v1054_v13  ;;  %v1048_v19 = vmul.f32 0.03125, %v1040_v15 }
 0x3ab   : > { %1105 = vst [vmem:[%s1881_s22 + $0x10] sm:$0xff] %v1097_v16  ;;  %v1080_v55 = vmul.f32 %v1272_v62, %v1065_v17 }
 0x3ac   : > { %v1507_v20 = vpop.eup %1506  ;;  %v1056_v21 = vadd.f32 1e-12, %v1048_v19 }
 0x3ad   : > { %v1509_v22 = vpop.eup %1508  ;;  %v1095_v23 = vadd.f32 %v1273_v5, %v1080_v55  ;;  %v1068_v24 = vmul.f32 %v1507_v20, %v1846_v3 }
 0x3ae   : > { %v1069_v25 = vmul.f32 %v1509_v22, %v1848_v4  ;;  %1516 = vrsqrt.f32 %v1056_v21 }
 0x3af   : > { %1103 = vst [vmem:[%s1881_s22] sm:$0xff] %v1095_v23  ;;  %v1083_v60 = vmul.f32 %v1272_v62, %v1068_v24 }
 0x3b0   : > { %v1511_v26 = vpop.eup %1510  ;;  %v1084_v27 = vmul.f32 %v1272_v62, %v1069_v25 }
 0x3b1   : > { %v1513_v28 = vpop.eup %1512  ;;  %v1098_v29 = vadd.f32 %v1273_v5, %v1083_v60  ;;  %v1066_v30 = vmul.f32 %v1511_v26, %v1850_v6 }
 0x3b2   : > { %v1099_v31 = vadd.f32 %v1273_v5, %v1084_v27  ;;  %v1071_v32 = vmul.f32 %v1513_v28, %v1856_v12 }
 0x3b3   : > { %1106 = vst [vmem:[%s1881_s22 + $0x18] sm:$0xff] %v1098_v29  ;;  %v1081_v3 = vmul.f32 %v1272_v62, %v1066_v30 }
 0x3b4   : > { %v1515_v4 = vpop.eup %1514  ;;  %1107 = vst [vmem:[%s1881_s22 + $0x20] sm:$0xff] %v1099_v31  ;;  %v1086_v33 = vmul.f32 %v1272_v62, %v1071_v32 }
 0x3b5   : > { %v1096_v34 = vadd.f32 %v1273_v5, %v1081_v3  ;;  %v1070_v35 = vmul.f32 %v1515_v4, %v1858_v14 }
 0x3b6   : > { %v1101_v36 = vadd.f32 %v1273_v5, %v1086_v33 }
 0x3b7   : > { %1104 = vst [vmem:[%s1881_s22 + $0x8] sm:$0xff] %v1096_v34  ;;  %v1085_v37 = vmul.f32 %v1272_v62, %v1070_v35 }
 0x3b8   : > { %v1517_v6 = vpop.eup %1516  ;;  %1109 = vst [vmem:[%s1881_s22 + $0x30] sm:$0xff] %v1101_v36 }
 0x3b9   : > { %v1100_v38 = vadd.f32 %v1273_v5, %v1085_v37  ;;  %v1072_v12 = vmul.f32 %v1517_v6, %v1864_v18 }
 0x3bb   : > { %1108 = vst [vmem:[%s1881_s22 + $0x28] sm:$0xff] %v1100_v38  ;;  %v1087_v39 = vmul.f32 %v1272_v62, %v1072_v12 }
 0x3bd   : > { %v1102_v14 = vadd.f32 %v1273_v5, %v1087_v39 }
 0x3bf   : > { %1110 = vst [vmem:[%s1881_s22 + $0x38] sm:$0xff] %v1102_v14 }
 0x3c0   : > { %1531 = shalt.err (!%p1528_p3)
}
 0x3c1   : > { %s1532_s13 = scalar_lea.hbm %s1901_s10, 1024  ;;  %s1536_s22 = scalar_lea.hbm %s1957_s8, 2048 }
 0x3c2   : > { %p1533_p4 = scmp.ne.s32.totalorder %s1901_s10, %s1532_s13  ;;  %p1537_p9 = scmp.lt.u32.totalorder %s1901_s10, %s1957_s8 }
 0x3c3   : > { %p1538_p10 = scmp.lt.u32.totalorder %s1536_s22, %s1532_s13  ;;  %p1540_p12 = scmp.lt.u32.totalorder %s1532_s13, %s1901_s10 }
 0x3c4   : > { %p1534_p7 = pnand %p1533_p4, %p1671_p5 }
 0x3c5   : > { %p1539_p11 = por %p1538_p10, %p1537_p9 }
 0x3c6   : > { %p1535_p8 = pneg %p1534_p7 }
 0x3c7   : > { %p1541_p13 = por %p1540_p12, %p1539_p11 }
 0x3c9   : > { %p1542_p0 = pnand %p1541_p13, %p1535_p8 }
 0x3cb   : > { %1545 = shalt.err (!%p1542_p0)
}
 0x3cc   : > { %s1586_s26 = smov 128   ;;  %s1587_s17 = smov 8  }
 0x3cd   : > { %1428 = dma.vmem_to_hbm [thread:$0]  (%p1671_p5), %s1903_s24, 1024, %s1901_s10, %s1908_s12, %s1586_s26, %s1586_s26, %s1587_s17  }
 0x3ce PF: > { %p1434_p1 = scmp.ge.s32.totalorder %s1580_s30, 2  ;;  %s1140_s9 = sand.u32 1, %s1568_s27  }
 0x3cf   : > { %s1141_s18 = scalar_lea.sflag [#allocation3], %s1140_s9 }
 0x3d0   : > { %p1431_p2 = pnand %p1434_p1, %p1675_p6 }
 0x3d2   : > { %1563 = dma.done.wait (!%p1431_p2), %s1141_s18, 1024  }
 0x3d3   : > { %1565 = vsyncadd (!%p1431_p2), %s1141_s18, 4294966272  ;;  %p18_p3 = scmp.ge.s32.totalorder %s1658_s11, 4   ;;  %s1968_s27 = smov %s1572_s28 }
 0x3d4   : > { %s1969_s28 = smov %s1576_s29  ;;  %s1970_s29 = smov %s1669_s14 }
 0x3d5   : > { %s1971_s30 = smov %s1658_s11  ;;  %20 = sbr.rel (!%p18_p3) target bundleno = 3 (0x3), region = 90 }
 0x3dc   :  { %1146 = vsyncpa [#allocation3], 1 }
 0x3dd   :  { %1148 = vsyncpa [#allocation3 + $0x1], 1 }

</bundles_post_ra>
